<compile_context>
chip_gen: v7x
topology: tpu7x:2x2x1
jax: 0.10.0
libtpu: 0.0.40
codegen_flags: <defaults>
</compile_context>

<pallas_src>
import jax
import jax.numpy as jnp
from jax.experimental import pallas as pl
from jax.experimental.pallas import tpu as pltpu

IN_DIM = 9
HID_DIM = 6


def autoencoder_kernel(xt_ref, we_ref, be_ref, wd_ref, bd_ref, enc_ref, dec_ref):
    # xt_ref:  [9, T]   (features on sublanes, batch on lanes)
    # we_ref:  [6, 9]   be_ref: [6, 1]
    # wd_ref:  [9, 6]   bd_ref: [9, 1]
    xt = xt_ref[...]

    # encoder: relu(W_enc @ xT + b_enc)  -> [6, T]
    enc = jnp.dot(we_ref[...], xt, preferred_element_type=jnp.float32)
    enc = jnp.maximum(enc + be_ref[...], 0.0)
    enc_ref[...] = enc.astype(enc_ref.dtype)

    # decoder: W_dec @ encT + b_dec      -> [9, T]   (no activation, matches PyTorch)
    dec = jnp.dot(wd_ref[...], enc, preferred_element_type=jnp.float32)
    dec_ref[...] = (dec + bd_ref[...]).astype(dec_ref.dtype)


def autoencoder_forward(x, w_enc, b_enc, w_dec, b_dec, *, tile_n=2048):
    """x: [N, 9]; w_enc: [6, 9]; b_enc: [6]; w_dec: [9, 6]; b_dec: [9].
    Returns (encoded [N, 6], decoded [N, 9]) — same semantics as the PyTorch module."""
    n = x.shape[0]
    dtype = x.dtype

    # Tile must be a multiple of 128 lanes.
    tile_n = max(128, (tile_n // 128) * 128)
    n_pad = pl.cdiv(n, tile_n) * tile_n
    grid = (n_pad // tile_n,)

    # Lane-dense layout + padding done in the JAX wrapper (layout plumbing only).
    xt = jnp.pad(x, ((0, n_pad - n), (0, 0))).T       # [9, N_pad]
    be = b_enc.reshape(HID_DIM, 1)                    # [6, 1]
    bd = b_dec.reshape(IN_DIM, 1)                     # [9, 1]

    cost = pl.CostEstimate(
        flops=2 * n_pad * (IN_DIM * HID_DIM + HID_DIM * IN_DIM),
        transcendentals=0,
        bytes_accessed=n_pad * (IN_DIM + HID_DIM + IN_DIM) * x.dtype.itemsize,
    )

    enc_t, dec_t = pl.pallas_call(
        autoencoder_kernel,
        out_shape=(
            jax.ShapeDtypeStruct((HID_DIM, n_pad), dtype),
            jax.ShapeDtypeStruct((IN_DIM, n_pad), dtype),
        ),
        grid_spec=pltpu.PrefetchScalarGridSpec(
            num_scalar_prefetch=0,
            grid=grid,
            in_specs=[
                pl.BlockSpec((IN_DIM, tile_n), lambda i: (0, i)),     # xT tile
                pl.BlockSpec((HID_DIM, IN_DIM), lambda i: (0, 0)),    # W_enc (resident)
                pl.BlockSpec((HID_DIM, 1), lambda i: (0, 0)),         # b_enc (resident)
                pl.BlockSpec((IN_DIM, HID_DIM), lambda i: (0, 0)),    # W_dec (resident)
                pl.BlockSpec((IN_DIM, 1), lambda i: (0, 0)),          # b_dec (resident)
            ],
            out_specs=(
                pl.BlockSpec((HID_DIM, tile_n), lambda i: (0, i)),    # encT tile
                pl.BlockSpec((IN_DIM, tile_n), lambda i: (0, i)),     # decT tile
            ),
        ),
        compiler_params=pltpu.CompilerParams(
            dimension_semantics=("parallel",),
            vmem_limit_bytes=32 << 20,
        ),
        cost_estimate=cost,
    )(xt, w_enc, be, w_dec, bd)

    # Back to the PyTorch [N, features] convention; drop batch padding.
    encoded = enc_t[:, :n].T
    decoded = dec_t[:, :n].T
    return encoded, decoded


def _init_params(key):
    """Deterministic parameter init (uniform, PyTorch-Linear-like bounds)."""
    k1, k2, k3, k4 = jax.random.split(key, 4)
    bound_e = 1.0 / jnp.sqrt(IN_DIM)
    bound_d = 1.0 / jnp.sqrt(HID_DIM)
    w_enc = jax.random.uniform(k1, (HID_DIM, IN_DIM), jnp.float32, -bound_e, bound_e)
    b_enc = jax.random.uniform(k2, (HID_DIM,), jnp.float32, -bound_e, bound_e)
    w_dec = jax.random.uniform(k3, (IN_DIM, HID_DIM), jnp.float32, -bound_d, bound_d)
    b_dec = jax.random.uniform(k4, (IN_DIM,), jnp.float32, -bound_d, bound_d)
    return w_enc, b_enc, w_dec, b_dec


if __name__ == "__main__":
    key = jax.random.PRNGKey(0)
    kx, kp = jax.random.split(key)

    batch = 8
    x = jax.random.normal(kx, (batch, IN_DIM), jnp.float32)
    w_enc, b_enc, w_dec, b_dec = _init_params(kp)

    enc, dec = autoencoder_forward(x, w_enc, b_enc, w_dec, b_dec)
    jax.block_until_ready((enc, dec))

    # Pure-JAX reference check (PyTorch convention: y = x @ W.T + b).
    enc_ref = jnp.maximum(x @ w_enc.T + b_enc, 0.0)
    dec_ref = enc_ref @ w_dec.T + b_dec
    assert enc.shape == (batch, HID_DIM) and dec.shape == (batch, IN_DIM)
    assert jnp.allclose(enc, enc_ref, atol=1e-5, rtol=1e-5)
    assert jnp.allclose(dec, dec_ref, atol=1e-5, rtol=1e-5)

    print("KERNEL_OK")
</pallas_src>

<mosaic_0001>
module attributes {stable_mosaic.version = 11 : i64} {
  func.func @autoencoder_kernel(%arg0: i32, %arg1: memref<9x2048xf32, #tpu.memory_space<vmem>>, %arg2: memref<6x9xf32, #tpu.memory_space<vmem>>, %arg3: memref<6x1xf32, #tpu.memory_space<vmem>>, %arg4: memref<9x6xf32, #tpu.memory_space<vmem>>, %arg5: memref<9x1xf32, #tpu.memory_space<vmem>>, %arg6: memref<6x2048xf32, #tpu.memory_space<vmem>>, %arg7: memref<9x2048xf32, #tpu.memory_space<vmem>>) attributes {dimension_semantics = [#tpu.dimension_semantics<parallel>], iteration_bounds = array<i64: 1>, scalar_prefetch = 0 : i64, scratch_operands = 0 : i64, tpu.core_type = #tpu.core_type<tc>, window_params = [{transform_indices = @transform_0, window_bounds = array<i64: 9, 2048>}, {pipeline_mode = #tpu.pipeline_mode<synchronous>, transform_indices = @transform_1, window_bounds = array<i64: 6, 9>}, {pipeline_mode = #tpu.pipeline_mode<synchronous>, transform_indices = @transform_2, window_bounds = array<i64: 6, 1>}, {pipeline_mode = #tpu.pipeline_mode<synchronous>, transform_indices = @transform_3, window_bounds = array<i64: 9, 6>}, {pipeline_mode = #tpu.pipeline_mode<synchronous>, transform_indices = @transform_4, window_bounds = array<i64: 9, 1>}, {transform_indices = @transform_5, window_bounds = array<i64: 6, 2048>}, {transform_indices = @transform_6, window_bounds = array<i64: 9, 2048>}]} {
    %c0 = arith.constant 0 : index
    %c0_0 = arith.constant 0 : index
    %0 = vector.load %arg1[%c0, %c0_0] : memref<9x2048xf32, #tpu.memory_space<vmem>>, vector<9x2048xf32>
    %c0_1 = arith.constant 0 : index
    %c0_2 = arith.constant 0 : index
    %1 = vector.load %arg2[%c0_1, %c0_2] : memref<6x9xf32, #tpu.memory_space<vmem>>, vector<6x9xf32>
    %cst = arith.constant dense<0.000000e+00> : vector<6x2048xf32>
    %2 = tpu.matmul %1, %0, %cst {dimension_numbers = #tpu.dot_dimension_numbers<[1], [0], [0], [1], [0, 0, 1, 1], [], []>} : vector<6x9xf32>, vector<9x2048xf32>, vector<6x2048xf32> -> vector<6x2048xf32>
    %c0_3 = arith.constant 0 : index
    %c0_4 = arith.constant 0 : index
    %3 = vector.load %arg3[%c0_3, %c0_4] : memref<6x1xf32, #tpu.memory_space<vmem>>, vector<6x1xf32>
    %4 = vector.broadcast %3 : vector<6x1xf32> to vector<6x2048xf32>
    %5 = arith.addf %2, %4 : vector<6x2048xf32>
    %cst_5 = arith.constant 0.000000e+00 : f32
    %6 = vector.broadcast %cst_5 : f32 to vector<6x2048xf32>
    %7 = arith.maximumf %5, %6 : vector<6x2048xf32>
    %c0_6 = arith.constant 0 : index
    %c0_7 = arith.constant 0 : index
    %8 = vector.load %arg6[%c0_6, %c0_7] : memref<6x2048xf32, #tpu.memory_space<vmem>>, vector<6x2048xf32>
    tpu.vector_store %arg6[%c0_6, %c0_7], %7 {strides = array<i32>} : memref<6x2048xf32, #tpu.memory_space<vmem>>, vector<6x2048xf32>,
    %c0_8 = arith.constant 0 : index
    %c0_9 = arith.constant 0 : index
    %9 = vector.load %arg4[%c0_8, %c0_9] : memref<9x6xf32, #tpu.memory_space<vmem>>, vector<9x6xf32>
    %cst_10 = arith.constant dense<0.000000e+00> : vector<9x2048xf32>
    %10 = tpu.matmul %9, %7, %cst_10 {dimension_numbers = #tpu.dot_dimension_numbers<[1], [0], [0], [1], [0, 0, 1, 1], [], []>} : vector<9x6xf32>, vector<6x2048xf32>, vector<9x2048xf32> -> vector<9x2048xf32>
    %c0_11 = arith.constant 0 : index
    %c0_12 = arith.constant 0 : index
    %11 = vector.load %arg5[%c0_11, %c0_12] : memref<9x1xf32, #tpu.memory_space<vmem>>, vector<9x1xf32>
    %12 = vector.broadcast %11 : vector<9x1xf32> to vector<9x2048xf32>
    %13 = arith.addf %10, %12 : vector<9x2048xf32>
    %c0_13 = arith.constant 0 : index
    %c0_14 = arith.constant 0 : index
    %14 = vector.load %arg7[%c0_13, %c0_14] : memref<9x2048xf32, #tpu.memory_space<vmem>>, vector<9x2048xf32>
    tpu.vector_store %arg7[%c0_13, %c0_14], %13 {strides = array<i32>} : memref<9x2048xf32, #tpu.memory_space<vmem>>, vector<9x2048xf32>,
    return
  }
  func.func @transform_0(%arg0: i32) -> (i32, i32) {
    %c0_i32 = arith.constant 0 : i32
    %c0_i32_0 = arith.constant 0 : i32
    return %c0_i32, %arg0 : i32, i32
  }
  func.func @transform_1(%arg0: i32) -> (i32, i32) {
    %c0_i32 = arith.constant 0 : i32
    %c0_i32_0 = arith.constant 0 : i32
    %c0_i32_1 = arith.constant 0 : i32
    return %c0_i32, %c0_i32_0 : i32, i32
  }
  func.func @transform_2(%arg0: i32) -> (i32, i32) {
    %c0_i32 = arith.constant 0 : i32
    %c0_i32_0 = arith.constant 0 : i32
    %c0_i32_1 = arith.constant 0 : i32
    return %c0_i32, %c0_i32_0 : i32, i32
  }
  func.func @transform_3(%arg0: i32) -> (i32, i32) {
    %c0_i32 = arith.constant 0 : i32
    %c0_i32_0 = arith.constant 0 : i32
    %c0_i32_1 = arith.constant 0 : i32
    return %c0_i32, %c0_i32_0 : i32, i32
  }
  func.func @transform_4(%arg0: i32) -> (i32, i32) {
    %c0_i32 = arith.constant 0 : i32
    %c0_i32_0 = arith.constant 0 : i32
    %c0_i32_1 = arith.constant 0 : i32
    return %c0_i32, %c0_i32_0 : i32, i32
  }
  func.func @transform_5(%arg0: i32) -> (i32, i32) {
    %c0_i32 = arith.constant 0 : i32
    %c0_i32_0 = arith.constant 0 : i32
    return %c0_i32, %arg0 : i32, i32
  }
  func.func @transform_6(%arg0: i32) -> (i32, i32) {
    %c0_i32 = arith.constant 0 : i32
    %c0_i32_0 = arith.constant 0 : i32
    return %c0_i32, %arg0 : i32, i32
  }
}

</mosaic_0001>

<bundles_post_ra>
// kernel: tpu_custom_call.1
= control target key start
LH: loop header
LB: loop body
LE: loop exit
PB: predicated region body
PF: predicated region fallthrough
CT: control target
= control target key end

     0   :  { %12 = vsyncpa [#allocation3], 0  ;;  %s1952_s0 = inlined_call_operand.hbm [shape: f32[9,2048], index: 0, kind: input, shape index: {}]   ;;  %s1953_s1 = inlined_call_operand.vmem [shape: f32[6,9], index: 1, kind: input, shape index: {}]   ;;  %s1954_s2 = inlined_call_operand.vmem [shape: f32[6,1], index: 2, kind: input, shape index: {}]   ;;  %s1955_s3 = inlined_call_operand.vmem [shape: f32[9,6], index: 3, kind: input, shape index: {}]   ;;  %s1956_s4 = inlined_call_operand.vmem [shape: f32[9,1], index: 4, kind: input, shape index: {}]   ;;  %s1957_s5 = inlined_call_operand.hbm [shape: f32[6,2048], index: 5, kind: output, shape index: {0}]   ;;  %s1958_s6 = inlined_call_operand.hbm [shape: f32[9,2048], index: 6, kind: output, shape index: {1}]  }
   0x1   :  { %13 = vsyncpa [#allocation4], 0 }
   0x2   :  { %14 = vsyncpa [#allocation7], 0  ;;  %s1665_s21 = smov [#allocation2]   ;;  %s1593_s25 = scalar_lea.hbm %s1952_s0, 4096 }
   0x3   :  { %s20_s22 = sshll.u32 %s1665_s21, 4  ;;  %p1594_p0 = scmp.ne.s32.totalorder %s1952_s0, %s1593_s25  ;;  %s21_s22 = int_to_ptr.vmem [resolvable:$true] %s20_s22 }
   0x4   :  { %p1597_p1 = scmp.lt.u32.totalorder %s1593_s25, %s1952_s0 }
   0x6   :  { %p1599_p2 = pnand %p1597_p1, %p1594_p0 }
   0x8   :  { %1602 = shalt.err (!%p1599_p2)
}
   0x9   :  { %s1603_s30 = scalar_lea.vmem %s21_s22, 4096  ;;  %p1608_p4 = scmp.lt.s32.totalorder %s21_s22, %s21_s22 }
   0xa   :  { %p1604_p3 = scmp.ne.s32.totalorder %s21_s22, %s1603_s30  ;;  %p1609_p5 = scmp.lt.s32.totalorder %s1603_s30, %s1603_s30 }
   0xc   :  { %p1610_p6 = por %p1609_p5, %p1608_p4 }
   0xe   :  { %p1611_p7 = pnand %p1610_p6, %p1604_p3 }
  0x10   :  { %1614 = shalt.err (!%p1611_p7)
}
  0x11   :  { %s1666_s7 = smov 2048   ;;  %s1667_s8 = smov 128  }
  0x12   :  { %26 = dma.hbm_to_vmem [thread:$0]  %s1952_s0, 4096, %s21_s22, [#allocation3], %s1666_s7, %s1666_s7, %s1667_s8  }
  0x13   :  { %1659 = dma.done.wait [#allocation3], 4096  }
  0x14   :  { %1660 = vsyncadd [#allocation3], 4294963200  ;;  %v1668_v0 = vmov 0.0   ;;  %v1669_v1 = vmov 0   ;;  %vm81_vm0 = vcmask 1040384   ;;  %vm1670_vm1 = vmmov 1  }
  0x15   :  { %194 = vmatprep.mubr.f32.mxu0 %v1668_v0  ;;  %265 = vmatprep.mubr.f32.mxu1 %v1668_v0  ;;  %vm1725_vm2 = vmpackc.low %vm81_vm0, %vm1670_vm1  ;;  %v39_v3 = vld [vmem:[#allocation2 + $0x8] sm:$0xff]  ;;  %v41_v5 = vld [vmem:[#allocation2 + $0x18] sm:$0xff]  ;;  %vm77_vm3 = vcmask 72704   ;;  %vm751_vm4 = vcmask 1045504   ;;  %vm744_vm5 = vcmask 48128  }
  0x16   :  { %1591 = vset.pattern.permute.xlu0 %v1669_v1  ;;  %1592 = vset.pattern.permute.xlu1 %v1669_v1  ;;  %v55_v4 = vld [vmem:[#allocation2 + $0x88] sm:$0x1]  ;;  %v57_v7 = vld [vmem:[#allocation2 + $0x98] sm:$0x1]  ;;  %v38_v8 = vld [vmem:[#allocation2] sm:$0xff] }
  0x17   :  { %v1535_v6 = vpack.c.bf16 %v55_v4, %v39_v3  ;;  %v54_v9 = vld [vmem:[#allocation2 + $0x80] sm:$0x1]  ;;  %v1541_v10 = vpack.c.bf16 %v57_v7, %v41_v5  ;;  %v40_v12 = vld [vmem:[#allocation2 + $0x10] sm:$0xff]  ;;  %v43_v16 = vld [vmem:[#allocation2 + $0x28] sm:$0xff] }
  0x18   :  { %v1538_v11 = vpack.c.bf16 %v54_v9, %v38_v8  ;;  %v56_v13 = vld [vmem:[#allocation2 + $0x90] sm:$0x1]  ;;  %v1732_v14 = vld [vmem:[%s1953_s1] sm:$0x3f]  ;;  %v59_v17 = vld [vmem:[#allocation2 + $0xa8] sm:$0x1] }
  0x19   :  { %1537 = vmatprep.subr.msk.bf16.mxu0 %vm1725_vm2, %v1535_v6  ;;  %v1544_v15 = vpack.c.bf16 %v56_v13, %v40_v12  ;;  %v45_v18 = vld [vmem:[#allocation2 + $0x38] sm:$0xff]  ;;  %1543 = vmatprep.subr.msk.bf16.mxu1 %vm1725_vm2, %v1541_v10  ;;  %v1547_v19 = vpack.c.bf16 %v59_v17, %v43_v16  ;;  %v42_v21 = vld [vmem:[#allocation2 + $0x20] sm:$0xff]  ;;  %v44_v25 = vld [vmem:[#allocation2 + $0x30] sm:$0xff] }
  0x1a   :  { %1540 = vmatpush1.bf16.msk.msra.mxu0 %vm1725_vm2, %v1538_v11  ;;  %v61_v20 = vld [vmem:[#allocation2 + $0xb8] sm:$0x1]  ;;  %v58_v22 = vld [vmem:[#allocation2 + $0xa0] sm:$0x1]  ;;  %v60_v26 = vld [vmem:[#allocation2 + $0xb0] sm:$0x1] }
  0x1b   :  { %1546 = vmatpush1.bf16.msk.msra.mxu1 %vm1725_vm2, %v1544_v15  ;;  %v1553_v23 = vpack.c.bf16 %v61_v20, %v45_v18  ;;  %v1550_v24 = vpack.c.bf16 %v58_v22, %v42_v21  ;;  %v47_v27 = vld [vmem:[#allocation2 + $0x48] sm:$0xff]  ;;  %1549 = vmatprep.subr.msk.bf16.mxu0 %vm1725_vm2, %v1547_v19  ;;  %v1556_v28 = vpack.c.bf16 %v60_v26, %v44_v25  ;;  %v49_v30 = vld [vmem:[#allocation2 + $0x58] sm:$0xff]  ;;  %v46_v34 = vld [vmem:[#allocation2 + $0x40] sm:$0xff] }
  0x1c   :  { %v63_v29 = vld [vmem:[#allocation2 + $0xc8] sm:$0x1]  ;;  %v65_v31 = vld [vmem:[#allocation2 + $0xd8] sm:$0x1]  ;;  %v62_v35 = vld [vmem:[#allocation2 + $0xc0] sm:$0x1] }
  0x1d   :  { %1481 = vmatmul.mubr.msk.f32.vlgmr.msra.gmra.mrb[0].mxu0 %vm77_vm3, %v1732_v14  ;;  %1555 = vmatprep.subr.msk.bf16.mxu1 %vm1725_vm2, %v1553_v23  ;;  %v1559_v32 = vpack.c.bf16 %v63_v29, %v47_v27  ;;  %v1565_v33 = vpack.c.bf16 %v65_v31, %v49_v30  ;;  %v48_v36 = vld [vmem:[#allocation2 + $0x50] sm:$0xff]  ;;  %v1562_v37 = vpack.c.bf16 %v62_v35, %v46_v34  ;;  %v51_v39 = vld [vmem:[#allocation2 + $0x68] sm:$0xff]  ;;  %v53_v42 = vld [vmem:[#allocation2 + $0x78] sm:$0xff] }
  0x1e   :  { %1484 = vmatmul.mubr.msk.f32.vlgmr.msra.gmra.mrb[0].mxu1 %vm77_vm3, %v1732_v14  ;;  %1552 = vmatpush1.bf16.msk.msra.mxu0 %vm1725_vm2, %v1550_v24  ;;  %v64_v38 = vld [vmem:[#allocation2 + $0xd0] sm:$0x1]  ;;  %v67_v40 = vld [vmem:[#allocation2 + $0xe8] sm:$0x1]  ;;  %v69_v43 = vld [vmem:[#allocation2 + $0xf8] sm:$0x1] }
  0x1f   :  { %1558 = vmatpush1.bf16.msk.msra.mxu1 %vm1725_vm2, %v1556_v28  ;;  %336 = vmatprep.mubr.f32.mxu0 %v1668_v0  ;;  %v1568_v41 = vpack.c.bf16 %v64_v38, %v48_v36  ;;  %v50_v44 = vld [vmem:[#allocation2 + $0x60] sm:$0xff]  ;;  %v1571_v45 = vpack.c.bf16 %v67_v40, %v51_v39  ;;  %v52_v47 = vld [vmem:[#allocation2 + $0x70] sm:$0xff]  ;;  %v1577_v49 = vpack.c.bf16 %v69_v43, %v53_v42  ;;  %v733_v54 = vld [vmem:[%s1956_s4 + $0x8] sm:$0x1] }
  0x20   :  { %407 = vmatprep.mubr.f32.mxu1 %v1668_v0  ;;  %1561 = vmatprep.subr.msk.bf16.mxu0 %vm1725_vm2, %v1559_v32  ;;  %v66_v46 = vld [vmem:[#allocation2 + $0xe0] sm:$0x1]  ;;  %v68_v48 = vld [vmem:[#allocation2 + $0xf0] sm:$0x1]  ;;  %v1827_v22 = vld [vmem:[%s1955_s3 + $0x8] sm:$0x1] }
  0x21   :  { %1487 = vmatmul.mubr.msk.f32.vlgmr.msra.gmra.mrb[2].mxu0 %vm77_vm3, %v1732_v14  ;;  %1567 = vmatprep.subr.msk.bf16.mxu1 %vm1725_vm2, %v1565_v33  ;;  %v1574_v50 = vpack.c.bf16 %v66_v46, %v50_v44  ;;  %v1580_v51 = vpack.c.bf16 %v68_v48, %v52_v47  ;;  %v71_v52 = vld [vmem:[%s1954_s2] sm:$0x3f] }
  0x22   :  { %1490 = vmatmul.mubr.msk.f32.vlgmr.msra.gmra.mrb[2].mxu1 %vm77_vm3, %v1732_v14  ;;  %1564 = vmatpush1.bf16.msk.msra.mxu0 %vm1725_vm2, %v1562_v37  ;;  %v732_v53 = vld [vmem:[%s1956_s4] sm:$0xff] }
  0x23   :  { %1570 = vmatpush1.bf16.msk.msra.mxu1 %vm1725_vm2, %v1568_v41  ;;  %478 = vmatprep.mubr.f32.mxu0 %v1668_v0  ;;  %v1809_v9 = vld [vmem:[%s1955_s3] sm:$0xff]  ;;  %s1671_s3 = smov [#allocation5]  }
  0x24   :  { %549 = vmatprep.mubr.f32.mxu1 %v1668_v0  ;;  %1573 = vmatprep.subr.msk.bf16.mxu0 %vm1725_vm2, %v1571_v45  ;;  %s1454_s19 = sshll.u32 %s1671_s3, 4  ;;  %s1455_s19 = int_to_ptr.vmem [resolvable:$true] %s1454_s19 }
  0x25   :  { %1493 = vmatmul.mubr.msk.f32.vlgmr.msra.gmra.mrb[4].mxu0 %vm77_vm3, %v1732_v14  ;;  %1579 = vmatprep.subr.msk.bf16.mxu1 %vm1725_vm2, %v1577_v49  ;;  %s1615_s20 = scalar_lea.vmem %s1455_s19, 2048  ;;  %p1620_p9 = scmp.lt.s32.totalorder %s1455_s19, %s1455_s19 }
  0x26   :  { %1496 = vmatmul.mubr.msk.f32.vlgmr.msra.gmra.mrb[4].mxu1 %vm77_vm3, %v1732_v14  ;;  %1576 = vmatpush1.bf16.msk.msra.mxu0 %vm1725_vm2, %v1574_v50  ;;  %p1616_p8 = scmp.ne.s32.totalorder %s1455_s19, %s1615_s20  ;;  %p1621_p10 = scmp.lt.s32.totalorder %s1615_s20, %s1615_s20 }
  0x27   :  { %1582 = vmatpush1.bf16.msk.msra.mxu1 %vm1725_vm2, %v1580_v51  ;;  %620 = vmatprep.mubr.f32.mxu0 %v1668_v0 }
  0x28   :  { %691 = vmatprep.mubr.f32.mxu1 %v1668_v0  ;;  %74 = vperm.xlu0 %1591, %v71_v52   ;;  %p1622_p11 = por %p1621_p10, %p1620_p9 }
  0x29   :  { %1499 = vmatmul.mubr.msk.f32.vlgmr.msra.gmra.mrb[6].mxu0 %vm77_vm3, %v1732_v14  ;;  %741 = vperm.xlu1 %1592, %v733_v54  }
  0x2a   :  { %1502 = vmatmul.mubr.msk.f32.vlgmr.msra.gmra.mrb[6].mxu1 %vm77_vm3, %v1732_v14  ;;  %864 = vmatprep.mubr.f32.mxu0 %v1668_v0  ;;  %p1623_p12 = pnand %p1622_p11, %p1616_p8 }
  0x2b   :  { %941 = vmatprep.mubr.f32.mxu1 %v1668_v0 }
  0x2c   :  { %736 = vperm.xlu0 %1591, %v732_v53  }
  0xa7   :  { %v1799_v55 = vpop.permute.xlu0 %74 }
  0xf0   :  { %v196_v56 = vpop.f32.mrb[0].mxu0 }
  0xf1   :  { %v197_v57 = vadd.f32 %v196_v56, %v1799_v55  ;;  %v267_v58 = vpop.f32.mrb[0].mxu1  ;;  %v198_v59 = vpop.f32.mrb[1].mxu0 }
  0xf2   :  { %v268_v60 = vadd.f32 %v267_v58, %v1799_v55  ;;  %v199_v61 = vadd.f32 %v198_v59, %v1799_v55  ;;  %v269_v62 = vpop.f32.mrb[1].mxu1 }
  0xf3   :  { %v698_v63 = vmax.f32 %v197_v57, 0.0  ;;  %v270_v1 = vadd.f32 %v269_v62, %v1799_v55 }
  0xf4   :  { %v700_v2 = vmax.f32 %v268_v60, 0.0  ;;  %v699_v3 = vmax.f32 %v199_v61, 0.0  ;;  %v338_v4 = vpop.f32.mrb[2].mxu0 }
  0xf5   :  { %714 = vst [vmem:[#allocation5] sm:$0x3f] %v698_v63  ;;  %v701_v5 = vmax.f32 %v270_v1, 0.0  ;;  %v339_v6 = vadd.f32 %v338_v4, %v1799_v55  ;;  %v409_v7 = vpop.f32.mrb[2].mxu1  ;;  %v340_v8 = vpop.f32.mrb[3].mxu0 }
  0xf6   :  { %716 = vst [vmem:[#allocation5 + $0x10] sm:$0x3f] %v700_v2  ;;  %715 = vst [vmem:[#allocation5 + $0x8] sm:$0x3f] %v699_v3  ;;  %v410_v10 = vadd.f32 %v409_v7, %v1799_v55  ;;  %v341_v11 = vadd.f32 %v340_v8, %v1799_v55  ;;  %v411_v12 = vpop.f32.mrb[3].mxu1  ;;  %1503 = vmatprep.subr.msk.mxu0 %vm751_vm4, %v699_v3 }
  0xf7   :  { %717 = vst [vmem:[#allocation5 + $0x18] sm:$0x3f] %v701_v5  ;;  %v702_v13 = vmax.f32 %v339_v6, 0.0  ;;  %v412_v14 = vadd.f32 %v411_v12, %v1799_v55  ;;  %1507 = vmatprep.subr.msk.mxu1 %vm751_vm4, %v701_v5  ;;  %1504 = vmatpush1.msk.msra.mxu0 %vm751_vm4, %v698_v63 }
  0xf8   :  { %v704_v15 = vmax.f32 %v410_v10, 0.0  ;;  %v703_v16 = vmax.f32 %v341_v11, 0.0  ;;  %1508 = vmatpush1.msk.msra.mxu1 %vm751_vm4, %v700_v2  ;;  %v480_v17 = vpop.f32.mrb[4].mxu0  ;;  %1505 = vmatmul.mubr.msk.f32.vlgmr.msra.gmra.mrb[8].mxu0 %vm744_vm5, %v1809_v9 }
  0xf9   :  { %718 = vst [vmem:[#allocation5 + $0x20] sm:$0x3f] %v702_v13  ;;  %v705_v18 = vmax.f32 %v412_v14, 0.0  ;;  %v481_v19 = vadd.f32 %v480_v17, %v1799_v55  ;;  %v551_v20 = vpop.f32.mrb[4].mxu1  ;;  %1509 = vmatmul.mubr.msk.f32.vlgmr.msra.gmra.mrb[8].mxu1 %vm744_vm5, %v1809_v9  ;;  %v482_v21 = vpop.f32.mrb[5].mxu0  ;;  %870 = vmatprep.mubr.f32.mxu0 %v1668_v0 }
  0xfa   :  { %720 = vst [vmem:[#allocation5 + $0x30] sm:$0x3f] %v704_v15  ;;  %719 = vst [vmem:[#allocation5 + $0x28] sm:$0x3f] %v703_v16  ;;  %v552_v23 = vadd.f32 %v551_v20, %v1799_v55  ;;  %v483_v24 = vadd.f32 %v482_v21, %v1799_v55  ;;  %v553_v25 = vpop.f32.mrb[5].mxu1  ;;  %1511 = vmatprep.subr.msk.mxu0 %vm751_vm4, %v703_v16  ;;  %947 = vmatprep.mubr.f32.mxu1 %v1668_v0 }
  0xfb   :  { %721 = vst [vmem:[#allocation5 + $0x38] sm:$0x3f] %v705_v18  ;;  %v706_v26 = vmax.f32 %v481_v19, 0.0  ;;  %v554_v27 = vadd.f32 %v553_v25, %v1799_v55  ;;  %1515 = vmatprep.subr.msk.mxu1 %vm751_vm4, %v705_v18  ;;  %1512 = vmatpush1.msk.msra.mxu0 %vm751_vm4, %v702_v13 }
  0xfc   :  { %v708_v28 = vmax.f32 %v552_v23, 0.0  ;;  %v707_v29 = vmax.f32 %v483_v24, 0.0  ;;  %1516 = vmatpush1.msk.msra.mxu1 %vm751_vm4, %v704_v15  ;;  %v622_v30 = vpop.f32.mrb[6].mxu0  ;;  %1506 = vmatmul.mubr.msk.f32.gmra.mrb[10].mxu0 %vm744_vm5, %v1827_v22 }
  0xfd   :  { %722 = vst [vmem:[#allocation5 + $0x40] sm:$0x3f] %v706_v26  ;;  %v709_v31 = vmax.f32 %v554_v27, 0.0  ;;  %v623_v32 = vadd.f32 %v622_v30, %v1799_v55  ;;  %v693_v33 = vpop.f32.mrb[6].mxu1  ;;  %1510 = vmatmul.mubr.msk.f32.gmra.mrb[10].mxu1 %vm744_vm5, %v1827_v22  ;;  %v624_v34 = vpop.f32.mrb[7].mxu0  ;;  %1018 = vmatprep.mubr.f32.mxu0 %v1668_v0 }
  0xfe   :  { %724 = vst [vmem:[#allocation5 + $0x50] sm:$0x3f] %v708_v28  ;;  %723 = vst [vmem:[#allocation5 + $0x48] sm:$0x3f] %v707_v29  ;;  %v694_v35 = vadd.f32 %v693_v33, %v1799_v55  ;;  %v625_v36 = vadd.f32 %v624_v34, %v1799_v55  ;;  %v695_v37 = vpop.f32.mrb[7].mxu1  ;;  %1519 = vmatprep.subr.msk.mxu0 %vm751_vm4, %v707_v29  ;;  %1095 = vmatprep.mubr.f32.mxu1 %v1668_v0 }
  0xff   :  { %725 = vst [vmem:[#allocation5 + $0x58] sm:$0x3f] %v709_v31  ;;  %v710_v38 = vmax.f32 %v623_v32, 0.0  ;;  %v696_v39 = vadd.f32 %v695_v37, %v1799_v55  ;;  %1523 = vmatprep.subr.msk.mxu1 %vm751_vm4, %v709_v31 }
 0x100   :  { %v712_v40 = vmax.f32 %v694_v35, 0.0  ;;  %v711_v41 = vmax.f32 %v625_v36, 0.0  ;;  %1513 = vmatmul.mubr.msk.f32.vlgmr.msra.gmra.mrb[12].mxu0 %vm744_vm5, %v1809_v9 }
 0x101   :  { %726 = vst [vmem:[#allocation5 + $0x60] sm:$0x3f] %v710_v38  ;;  %v713_v42 = vmax.f32 %v696_v39, 0.0  ;;  %1517 = vmatmul.mubr.msk.f32.vlgmr.msra.gmra.mrb[12].mxu1 %vm744_vm5, %v1809_v9  ;;  %1520 = vmatpush1.msk.msra.mxu0 %vm751_vm4, %v706_v26 }
 0x102   :  { %728 = vst [vmem:[#allocation5 + $0x70] sm:$0x3f] %v712_v40  ;;  %727 = vst [vmem:[#allocation5 + $0x68] sm:$0x3f] %v711_v41  ;;  %1524 = vmatpush1.msk.msra.mxu1 %vm751_vm4, %v708_v28  ;;  %1527 = vmatprep.subr.msk.mxu0 %vm751_vm4, %v711_v41 }
 0x103   :  { %729 = vst [vmem:[#allocation5 + $0x78] sm:$0x3f] %v713_v42  ;;  %1531 = vmatprep.subr.msk.mxu1 %vm751_vm4, %v713_v42  ;;  %1024 = vmatprep.mubr.f32.mxu0 %v1668_v0 }
 0x104   :  { %1101 = vmatprep.mubr.f32.mxu1 %v1668_v0  ;;  %1514 = vmatmul.mubr.msk.f32.gmra.mrb[14].mxu0 %vm744_vm5, %v1827_v22 }
 0x105   :  { %1518 = vmatmul.mubr.msk.f32.gmra.mrb[14].mxu1 %vm744_vm5, %v1827_v22  ;;  %1172 = vmatprep.mubr.f32.mxu0 %v1668_v0 }
 0x106   :  { %1249 = vmatprep.mubr.f32.mxu1 %v1668_v0 }
 0x108   :  { %1521 = vmatmul.mubr.msk.f32.vlgmr.msra.gmra.mrb[16].mxu0 %vm744_vm5, %v1809_v9 }
 0x109   :  { %1525 = vmatmul.mubr.msk.f32.vlgmr.msra.gmra.mrb[16].mxu1 %vm744_vm5, %v1809_v9  ;;  %1528 = vmatpush1.msk.msra.mxu0 %vm751_vm4, %v710_v38 }
 0x10a   :  { %1532 = vmatpush1.msk.msra.mxu1 %vm751_vm4, %v712_v40  ;;  %1178 = vmatprep.mubr.f32.mxu0 %v1668_v0 }
 0x10b   :  { %1255 = vmatprep.mubr.f32.mxu1 %v1668_v0 }
 0x10c   :  { %1522 = vmatmul.mubr.msk.f32.gmra.mrb[18].mxu0 %vm744_vm5, %v1827_v22 }
 0x10d   :  { %1526 = vmatmul.mubr.msk.f32.gmra.mrb[18].mxu1 %vm744_vm5, %v1827_v22  ;;  %1326 = vmatprep.mubr.f32.mxu0 %v1668_v0 }
 0x10e   :  { %1403 = vmatprep.mubr.f32.mxu1 %v1668_v0 }
 0x110   :  { %1529 = vmatmul.mubr.msk.f32.vlgmr.msra.gmra.mrb[20].mxu0 %vm744_vm5, %v1809_v9 }
 0x111   :  { %1533 = vmatmul.mubr.msk.f32.vlgmr.msra.gmra.mrb[20].mxu1 %vm744_vm5, %v1809_v9  ;;  %1332 = vmatprep.mubr.f32.mxu0 %v1668_v0 }
 0x112   :  { %1409 = vmatprep.mubr.f32.mxu1 %v1668_v0 }
 0x114   :  { %1530 = vmatmul.mubr.msk.f32.gmra.mrb[22].mxu0 %vm744_vm5, %v1827_v22 }
 0x115   :  { %1534 = vmatmul.mubr.msk.f32.gmra.mrb[22].mxu1 %vm744_vm5, %v1827_v22 }
 0x116   :  { %1626 = shalt.err (!%p1623_p12)
}
 0x117   :  { %s1627_s23 = scalar_lea.hbm %s1957_s5, 2048 }
 0x118   :  { %p1628_p13 = scmp.ne.s32.totalorder %s1957_s5, %s1627_s23  ;;  %p1631_p0 = scmp.lt.u32.totalorder %s1627_s23, %s1957_s5 }
 0x11a   :  { %p1633_p1 = pnand %p1631_p0, %p1628_p13 }
 0x11c   :  { %1636 = shalt.err (!%p1633_p1)
}
 0x11d   :  { %1457 = dma.vmem_to_hbm [thread:$0]  %s1455_s19, 2048, %s1957_s5, [#allocation4]   ;;  %v1901_v0 = vpop.permute.xlu0 %736  ;;  %v1906_v50 = vpop.permute.xlu1 %741 }
 0x11e   :  { %s1672_s5 = smov [#allocation6]  }
 0x11f   :  { %s1463_s30 = sshll.u32 %s1672_s5, 4  ;;  %s1464_s30 = int_to_ptr.vmem [resolvable:$true] %s1463_s30 }
 0x120   :  { %s1637_s9 = scalar_lea.vmem %s1464_s30, 4096  ;;  %p1642_p3 = scmp.lt.s32.totalorder %s1464_s30, %s1464_s30 }
 0x121   :  { %p1638_p2 = scmp.ne.s32.totalorder %s1464_s30, %s1637_s9  ;;  %p1643_p4 = scmp.lt.s32.totalorder %s1637_s9, %s1637_s9 }
 0x123   :  { %p1644_p5 = por %p1643_p4, %p1642_p3 }
 0x125   :  { %p1645_p6 = pnand %p1644_p5, %p1638_p2 }
 0x1cb   :  { %v866_v43 = vpop.f32.mrb[8].mxu0 }
 0x1cc   :  { %v867_v44 = vadd.f32 %v866_v43, %v1901_v0  ;;  %v943_v45 = vpop.f32.mrb[8].mxu1  ;;  %v868_v46 = vpop.f32.mrb[9].mxu0 }
 0x1cd   :  { %v944_v47 = vadd.f32 %v943_v45, %v1901_v0  ;;  %v869_v48 = vadd.f32 %v868_v46, %v1901_v0  ;;  %v945_v49 = vpop.f32.mrb[9].mxu1 }
 0x1ce   :  { %1416 = vst [vmem:[#allocation6] sm:$0xff] %v867_v44  ;;  %v946_v51 = vadd.f32 %v945_v49, %v1901_v0 }
 0x1cf   :  { %1418 = vst [vmem:[#allocation6 + $0x10] sm:$0xff] %v944_v47  ;;  %1417 = vst [vmem:[#allocation6 + $0x8] sm:$0xff] %v869_v48  ;;  %v872_v52 = vpop.f32.mrb[10].mxu0 }
 0x1d0   :  { %1419 = vst [vmem:[#allocation6 + $0x18] sm:$0xff] %v946_v51  ;;  %v949_v53 = vpop.f32.mrb[10].mxu1  ;;  %v873_v54 = vadd.f32 %v872_v52, %v1906_v50  ;;  %v874_v55 = vpop.f32.mrb[11].mxu0 }
 0x1d1   :  { %v950_v56 = vadd.f32 %v949_v53, %v1906_v50  ;;  %v875_v57 = vadd.f32 %v874_v55, %v1906_v50  ;;  %v951_v58 = vpop.f32.mrb[11].mxu1 }
 0x1d2   :  { %1432 = vst [vmem:[#allocation6 + $0x80] sm:$0x1] %v873_v54  ;;  %v952_v59 = vadd.f32 %v951_v58, %v1906_v50 }
 0x1d3   :  { %1434 = vst [vmem:[#allocation6 + $0x90] sm:$0x1] %v950_v56  ;;  %1433 = vst [vmem:[#allocation6 + $0x88] sm:$0x1] %v875_v57  ;;  %v1020_v60 = vpop.f32.mrb[12].mxu0 }
 0x1d4   :  { %1435 = vst [vmem:[#allocation6 + $0x98] sm:$0x1] %v952_v59  ;;  %v1021_v61 = vadd.f32 %v1020_v60, %v1901_v0  ;;  %v1097_v62 = vpop.f32.mrb[12].mxu1  ;;  %v1022_v63 = vpop.f32.mrb[13].mxu0 }
 0x1d5   :  { %v1098_v1 = vadd.f32 %v1097_v62, %v1901_v0  ;;  %v1023_v2 = vadd.f32 %v1022_v63, %v1901_v0  ;;  %v1099_v3 = vpop.f32.mrb[13].mxu1 }
 0x1d6   :  { %1420 = vst [vmem:[#allocation6 + $0x20] sm:$0xff] %v1021_v61  ;;  %v1100_v4 = vadd.f32 %v1099_v3, %v1901_v0 }
 0x1d7   :  { %1422 = vst [vmem:[#allocation6 + $0x30] sm:$0xff] %v1098_v1  ;;  %1421 = vst [vmem:[#allocation6 + $0x28] sm:$0xff] %v1023_v2  ;;  %v1026_v5 = vpop.f32.mrb[14].mxu0 }
 0x1d8   :  { %1423 = vst [vmem:[#allocation6 + $0x38] sm:$0xff] %v1100_v4  ;;  %v1027_v6 = vadd.f32 %v1026_v5, %v1906_v50  ;;  %v1103_v7 = vpop.f32.mrb[14].mxu1  ;;  %v1028_v8 = vpop.f32.mrb[15].mxu0 }
 0x1d9   :  { %v1104_v9 = vadd.f32 %v1103_v7, %v1906_v50  ;;  %v1029_v10 = vadd.f32 %v1028_v8, %v1906_v50  ;;  %v1105_v11 = vpop.f32.mrb[15].mxu1 }
 0x1da   :  { %1436 = vst [vmem:[#allocation6 + $0xa0] sm:$0x1] %v1027_v6  ;;  %v1106_v12 = vadd.f32 %v1105_v11, %v1906_v50 }
 0x1db   :  { %1438 = vst [vmem:[#allocation6 + $0xb0] sm:$0x1] %v1104_v9  ;;  %1437 = vst [vmem:[#allocation6 + $0xa8] sm:$0x1] %v1029_v10  ;;  %v1174_v13 = vpop.f32.mrb[16].mxu0 }
 0x1dc   :  { %1439 = vst [vmem:[#allocation6 + $0xb8] sm:$0x1] %v1106_v12  ;;  %v1175_v14 = vadd.f32 %v1174_v13, %v1901_v0  ;;  %v1251_v15 = vpop.f32.mrb[16].mxu1  ;;  %v1176_v16 = vpop.f32.mrb[17].mxu0 }
 0x1dd   :  { %v1252_v17 = vadd.f32 %v1251_v15, %v1901_v0  ;;  %v1177_v18 = vadd.f32 %v1176_v16, %v1901_v0  ;;  %v1253_v19 = vpop.f32.mrb[17].mxu1 }
 0x1de   :  { %1424 = vst [vmem:[#allocation6 + $0x40] sm:$0xff] %v1175_v14  ;;  %v1254_v20 = vadd.f32 %v1253_v19, %v1901_v0 }
 0x1df   :  { %1426 = vst [vmem:[#allocation6 + $0x50] sm:$0xff] %v1252_v17  ;;  %1425 = vst [vmem:[#allocation6 + $0x48] sm:$0xff] %v1177_v18  ;;  %v1180_v21 = vpop.f32.mrb[18].mxu0 }
 0x1e0   :  { %1427 = vst [vmem:[#allocation6 + $0x58] sm:$0xff] %v1254_v20  ;;  %v1181_v22 = vadd.f32 %v1180_v21, %v1906_v50  ;;  %v1257_v23 = vpop.f32.mrb[18].mxu1  ;;  %v1182_v24 = vpop.f32.mrb[19].mxu0 }
 0x1e1   :  { %v1258_v25 = vadd.f32 %v1257_v23, %v1906_v50  ;;  %v1183_v26 = vadd.f32 %v1182_v24, %v1906_v50  ;;  %v1259_v27 = vpop.f32.mrb[19].mxu1 }
 0x1e2   :  { %1440 = vst [vmem:[#allocation6 + $0xc0] sm:$0x1] %v1181_v22  ;;  %v1260_v28 = vadd.f32 %v1259_v27, %v1906_v50 }
 0x1e3   :  { %1442 = vst [vmem:[#allocation6 + $0xd0] sm:$0x1] %v1258_v25  ;;  %1441 = vst [vmem:[#allocation6 + $0xc8] sm:$0x1] %v1183_v26  ;;  %v1328_v29 = vpop.f32.mrb[20].mxu0 }
 0x1e4   :  { %1443 = vst [vmem:[#allocation6 + $0xd8] sm:$0x1] %v1260_v28  ;;  %v1329_v30 = vadd.f32 %v1328_v29, %v1901_v0  ;;  %v1405_v31 = vpop.f32.mrb[20].mxu1  ;;  %v1330_v32 = vpop.f32.mrb[21].mxu0 }
 0x1e5   :  { %v1406_v33 = vadd.f32 %v1405_v31, %v1901_v0  ;;  %v1331_v34 = vadd.f32 %v1330_v32, %v1901_v0  ;;  %v1407_v35 = vpop.f32.mrb[21].mxu1 }
 0x1e6   :  { %1428 = vst [vmem:[#allocation6 + $0x60] sm:$0xff] %v1329_v30  ;;  %v1408_v36 = vadd.f32 %v1407_v35, %v1901_v0 }
 0x1e7   :  { %1430 = vst [vmem:[#allocation6 + $0x70] sm:$0xff] %v1406_v33  ;;  %1429 = vst [vmem:[#allocation6 + $0x68] sm:$0xff] %v1331_v34  ;;  %v1334_v37 = vpop.f32.mrb[22].mxu0 }
 0x1e8   :  { %1431 = vst [vmem:[#allocation6 + $0x78] sm:$0xff] %v1408_v36  ;;  %v1335_v38 = vadd.f32 %v1334_v37, %v1906_v50  ;;  %v1411_v39 = vpop.f32.mrb[22].mxu1  ;;  %v1336_v40 = vpop.f32.mrb[23].mxu0 }
 0x1e9   :  { %v1412_v41 = vadd.f32 %v1411_v39, %v1906_v50  ;;  %v1337_v42 = vadd.f32 %v1336_v40, %v1906_v50  ;;  %v1413_v43 = vpop.f32.mrb[23].mxu1 }
 0x1ea   :  { %1444 = vst [vmem:[#allocation6 + $0xe0] sm:$0x1] %v1335_v38  ;;  %v1414_v44 = vadd.f32 %v1413_v43, %v1906_v50 }
 0x1eb   :  { %1446 = vst [vmem:[#allocation6 + $0xf0] sm:$0x1] %v1412_v41  ;;  %1445 = vst [vmem:[#allocation6 + $0xe8] sm:$0x1] %v1337_v42 }
 0x1ec   :  { %1447 = vst [vmem:[#allocation6 + $0xf8] sm:$0x1] %v1414_v44 }
 0x1ed   :  { %1648 = shalt.err (!%p1645_p6)
}
 0x1ee   :  { %s1649_s11 = scalar_lea.hbm %s1958_s6, 4096 }
 0x1ef   :  { %p1650_p7 = scmp.ne.s32.totalorder %s1958_s6, %s1649_s11  ;;  %p1653_p8 = scmp.lt.u32.totalorder %s1649_s11, %s1958_s6 }
 0x1f1   :  { %p1655_p9 = pnand %p1653_p8, %p1650_p7 }
 0x1f3   :  { %1658 = shalt.err (!%p1655_p9)
}
 0x1f4   :  { %1469 = dma.vmem_to_hbm [thread:$0]  %s1464_s30, 4096, %s1958_s6, [#allocation7], %s1666_s7, %s1666_s7, %s1667_s8  }
 0x1f5   :  { %1661 = dma.done.wait [#allocation4], 2048  }
 0x1f6   :  { %1662 = vsyncadd [#allocation4], 4294965248 }
 0x1f7   :  { %1663 = dma.done.wait [#allocation7], 4096  }
 0x1f8   :  { %1664 = vsyncadd [#allocation7], 4294963200 }
 0x1f9   :  { %1476 = vsyncpa [#allocation3], 1 }
 0x1fa   :  { %1477 = vsyncpa [#allocation4], 1 }
 0x1fb   :  { %1478 = vsyncpa [#allocation7], 1 }

</bundles_post_ra>
